<compile_context>
chip_gen: v5e
topology: v5e:2x2
jax: 0.10.0
libtpu: 0.0.40
codegen_flags: <defaults>
</compile_context>

<pallas_src>
import math

import jax
import jax.numpy as jnp
from jax.experimental import pallas as pl
from jax.experimental.pallas import tpu as pltpu


def _round_up(n, m):
    return pl.cdiv(n, m) * m


def xornet_kernel(w1_ref, b1_ref, w2_ref, b2_ref, x_ref, o_ref):
    """VPU-only forward for one sublane-dense batch tile.

    w1_ref: SMEM (hidden, in)   -- PyTorch nn.Linear layout (out_features, in_features)
    b1_ref: SMEM (hidden,)
    w2_ref: SMEM (out, hidden)
    b2_ref: SMEM (out,)
    x_ref : VMEM (in,  TB//128, 128)   -- batch on sublanes x lanes
    o_ref : VMEM (out, TB//128, 128)   -- lane- and sublane-dense output
    """
    in_size = x_ref.shape[0]
    hidden = b1_ref.shape[0]
    out_size = b2_ref.shape[0]

    # Per-feature slabs, shape (TB//128, 128); upcast once to f32 for the FMAs
    # (safe on v5e, cheap on v6e/v7x when fed bf16).
    xs = [x_ref[i].astype(jnp.float32) for i in range(in_size)]

    # Hidden layer: h_j = relu(sum_i w1[j, i] * x_i + b1[j])  (scalar-broadcast FMAs).
    hs = []
    for j in range(hidden):
        acc = xs[0] * w1_ref[j, 0]
        for i in range(1, in_size):
            acc = acc + xs[i] * w1_ref[j, i]
        hs.append(jnp.maximum(acc + b1_ref[j], 0.0))

    # Output layer + sigmoid.  sigmoid(z) = 1 / (1 + exp(-z)); exp goes to the EUP,
    # and the approx reciprocal keeps the divide off the VALU as well.
    for k in range(out_size):
        z = hs[0] * w2_ref[k, 0]
        for j in range(1, hidden):
            z = z + hs[j] * w2_ref[k, j]
        z = z + b2_ref[k]
        o_ref[k] = pl.reciprocal(1.0 + jnp.exp(-z), approx=True).astype(o_ref.dtype)


def xornet_forward(x, w1, b1, w2, b2, *, block_b=256 * 1024, activation_dtype=None):
    """x: (B, in) float.  Weights/biases in PyTorch nn.Linear layout:
    w1: (hidden, in), b1: (hidden,), w2: (out, hidden), b2: (out,).
    Returns (B, out) f32, same semantics as the PyTorch module.

    activation_dtype: pass jnp.bfloat16 on v6e/v7x to halve input HBM traffic
    (kernel upcasts to f32 internally); default keeps x's dtype."""
    B, in_size = x.shape
    hidden, _ = w1.shape
    out_size, _ = w2.shape

    act_dt = x.dtype if activation_dtype is None else activation_dtype

    # Tile sizing: TB is a multiple of 1024 so TB//128 is a multiple of 8
    # (fully dense (8,128) VMEM tiles).  Cap TB by the (aligned) batch so we never
    # overshoot B by more than one tile, and split a single oversized tile in two
    # so both v7x TensorCores get work under dimension_semantics=("parallel",).
    b_aligned = _round_up(B, 1024)
    tb = min(_round_up(block_b, 1024), b_aligned)
    if b_aligned > 1024 and b_aligned <= tb:
        tb = _round_up(pl.cdiv(b_aligned, 2), 1024)
    b_pad = _round_up(B, tb)

    # One fused cast+pad+transpose copy to feature-major (in, Bpad), then a free
    # contiguous reshape to the sublane-dense (in, Bpad//128, 128) slab.
    # Padded lanes are zeros -> finite math, sliced away below.
    xt = jnp.pad(x.astype(act_dt), ((0, b_pad - B), (0, 0))).T
    xt = xt.reshape(in_size, b_pad // 128, 128)

    tb_rows = tb // 128
    n_rows = b_pad // 128

    smem = pl.BlockSpec(memory_space=pltpu.MemorySpace.SMEM)

    out = pl.pallas_call(
        xornet_kernel,
        out_shape=jax.ShapeDtypeStruct((out_size, n_rows, 128), jnp.float32),
        grid=(b_pad // tb,),
        in_specs=[
            smem,  # w1 (resident, scalar reads)
            smem,  # b1
            smem,  # w2
            smem,  # b2
            # x tile, pipelined over the batch.
            # TODO(synk): add pipeline_mode=pl.Buffered(3) here if an xprof trace
            # still shows exposed input DMA at this tile size.
            pl.BlockSpec((in_size, tb_rows, 128), lambda i: (0, i, 0)),
        ],
        out_specs=pl.BlockSpec((out_size, tb_rows, 128), lambda i: (0, i, 0)),
        compiler_params=pltpu.CompilerParams(
            dimension_semantics=("parallel",),  # shard batch tiles across TCs on v7x
            # Raises v5e's 16 MiB default scoped limit; stays <= v7x's 64 MiB physical.
            vmem_limit_bytes=40 * 1024 * 1024,
        ),
    )(
        w1.astype(jnp.float32),
        b1.astype(jnp.float32),
        w2.astype(jnp.float32),
        b2.astype(jnp.float32),
        xt,
    )

    out = out.reshape(out_size, b_pad)[:, :B]
    # (1, B) -> (B, 1) is a pure reshape for the module's out_size == 1; only the
    # general out_size > 1 case needs a (tiny) transpose.
    return out.reshape(B, out_size) if out_size == 1 else out.T


def xavier_uniform(key, fan_in, fan_out, shape):
    # Matches torch.nn.init.xavier_uniform_ (gain=1.0)
    bound = math.sqrt(6.0 / (fan_in + fan_out))
    return jax.random.uniform(key, shape, dtype=jnp.float32, minval=-bound, maxval=bound)


if __name__ == "__main__":
    input_size, hidden_size, output_size = 2, 4, 1
    batch = 8

    key = jax.random.PRNGKey(0)
    k_x, k_w1, k_w2, k_xbig = jax.random.split(key, 4)

    # Deterministic example input.
    x = jax.random.uniform(k_x, (batch, input_size), dtype=jnp.float32)

    # Parameters: xavier_uniform weights, zero biases (as in XORNet.__init__),
    # kept in PyTorch nn.Linear layout (out_features, in_features).
    w1 = xavier_uniform(k_w1, input_size, hidden_size, (hidden_size, input_size))
    w2 = xavier_uniform(k_w2, hidden_size, output_size, (output_size, hidden_size))
    b1 = jnp.zeros((hidden_size,), jnp.float32)
    b2 = jnp.zeros((output_size,), jnp.float32)

    def reference(xv):
        return jax.nn.sigmoid(jnp.maximum(xv @ w1.T + b1, 0.0) @ w2.T + b2)

    # Small run (matches the module's intended use).  Tolerance covers the EUP
    # approx-reciprocal in the sigmoid (<~1e-3 absolute on a (0,1)-valued output).
    out = xornet_forward(x, w1, b1, w2, b2)
    jax.block_until_ready(out)
    assert out.shape == (batch, output_size)
    assert jnp.allclose(out, reference(x), atol=5e-3), "mismatch vs reference (small batch)"

    # Non-1024-multiple batch: exercises padding.
    x_big = jax.random.uniform(k_xbig, (1000, input_size), dtype=jnp.float32)
    out_big = xornet_forward(x_big, w1, b1, w2, b2)
    jax.block_until_ready(out_big)
    assert out_big.shape == (1000, output_size)
    assert jnp.allclose(out_big, reference(x_big), atol=5e-3), "mismatch vs reference (padded batch)"

    # Multi-tile pipelined grid (forced small block_b) to exercise the grid path.
    x_mt = jax.random.uniform(k_xbig, (2500, input_size), dtype=jnp.float32)
    out_mt = xornet_forward(x_mt, w1, b1, w2, b2, block_b=1024)
    jax.block_until_ready(out_mt)
    assert out_mt.shape == (2500, output_size)
    assert jnp.allclose(out_mt, reference(x_mt), atol=5e-3), "mismatch vs reference (multi-tile)"

    # bf16-activation path (recommended on v6e/v7x); looser tolerance for the bf16 cast.
    out_bf = xornet_forward(x_big, w1, b1, w2, b2, activation_dtype=jnp.bfloat16)
    jax.block_until_ready(out_bf)
    assert out_bf.shape == (1000, output_size)
    assert jnp.allclose(out_bf, reference(x_big), atol=2e-2), "mismatch vs reference (bf16 activations)"

    print("KERNEL_OK")
</pallas_src>

<mosaic_0001>
module attributes {stable_mosaic.version = 11 : i64} {
  func.func @xornet_kernel(%arg0: i32, %arg1: memref<4x2xf32, #tpu.memory_space<smem>>, %arg2: memref<4xf32, #tpu.memory_space<smem>>, %arg3: memref<1x4xf32, #tpu.memory_space<smem>>, %arg4: memref<1xf32, #tpu.memory_space<smem>>, %arg5: memref<2x8x128xf32, #tpu.memory_space<vmem>>, %arg6: memref<1x8x128xf32, #tpu.memory_space<vmem>>) attributes {dimension_semantics = [#tpu.dimension_semantics<parallel>], iteration_bounds = array<i64: 1>, scalar_prefetch = 0 : i64, scratch_operands = 0 : i64, tpu.core_type = #tpu.core_type<tc>, window_params = [{transform_indices = @transform_0, window_bounds = array<i64: 4, 2>}, {transform_indices = @transform_1, window_bounds = array<i64: 4>}, {transform_indices = @transform_2, window_bounds = array<i64: 1, 4>}, {transform_indices = @transform_3, window_bounds = array<i64: 1>}, {transform_indices = @transform_4, window_bounds = array<i64: 2, 8, 128>}, {transform_indices = @transform_5, window_bounds = array<i64: 1, 8, 128>}]} {
    %c0 = arith.constant 0 : index
    %c0_0 = arith.constant 0 : index
    %c0_1 = arith.constant 0 : index
    %0 = vector.load %arg5[%c0, %c0_0, %c0_1] : memref<2x8x128xf32, #tpu.memory_space<vmem>>, vector<1x8x128xf32>
    %1 = vector.shape_cast %0 : vector<1x8x128xf32> to vector<8x128xf32>
    %c1 = arith.constant 1 : index
    %c0_2 = arith.constant 0 : index
    %c0_3 = arith.constant 0 : index
    %2 = vector.load %arg5[%c1, %c0_2, %c0_3] : memref<2x8x128xf32, #tpu.memory_space<vmem>>, vector<1x8x128xf32>
    %3 = vector.shape_cast %2 : vector<1x8x128xf32> to vector<8x128xf32>
    %c0_4 = arith.constant 0 : index
    %c0_5 = arith.constant 0 : index
    %4 = memref.load %arg1[%c0_4, %c0_5] : memref<4x2xf32, #tpu.memory_space<smem>>
    %5 = vector.broadcast %4 : f32 to vector<8x128xf32>
    %6 = arith.mulf %1, %5 : vector<8x128xf32>
    %c0_6 = arith.constant 0 : index
    %c1_7 = arith.constant 1 : index
    %7 = memref.load %arg1[%c0_6, %c1_7] : memref<4x2xf32, #tpu.memory_space<smem>>
    %8 = vector.broadcast %7 : f32 to vector<8x128xf32>
    %9 = arith.mulf %3, %8 : vector<8x128xf32>
    %10 = arith.addf %6, %9 : vector<8x128xf32>
    %c0_8 = arith.constant 0 : index
    %11 = memref.load %arg2[%c0_8] : memref<4xf32, #tpu.memory_space<smem>>
    %12 = vector.broadcast %11 : f32 to vector<8x128xf32>
    %13 = arith.addf %10, %12 : vector<8x128xf32>
    %cst = arith.constant 0.000000e+00 : f32
    %14 = vector.broadcast %cst : f32 to vector<8x128xf32>
    %15 = arith.maximumf %13, %14 : vector<8x128xf32>
    %c1_9 = arith.constant 1 : index
    %c0_10 = arith.constant 0 : index
    %16 = memref.load %arg1[%c1_9, %c0_10] : memref<4x2xf32, #tpu.memory_space<smem>>
    %17 = vector.broadcast %16 : f32 to vector<8x128xf32>
    %18 = arith.mulf %1, %17 : vector<8x128xf32>
    %c1_11 = arith.constant 1 : index
    %c1_12 = arith.constant 1 : index
    %19 = memref.load %arg1[%c1_11, %c1_12] : memref<4x2xf32, #tpu.memory_space<smem>>
    %20 = vector.broadcast %19 : f32 to vector<8x128xf32>
    %21 = arith.mulf %3, %20 : vector<8x128xf32>
    %22 = arith.addf %18, %21 : vector<8x128xf32>
    %c1_13 = arith.constant 1 : index
    %23 = memref.load %arg2[%c1_13] : memref<4xf32, #tpu.memory_space<smem>>
    %24 = vector.broadcast %23 : f32 to vector<8x128xf32>
    %25 = arith.addf %22, %24 : vector<8x128xf32>
    %cst_14 = arith.constant 0.000000e+00 : f32
    %26 = vector.broadcast %cst_14 : f32 to vector<8x128xf32>
    %27 = arith.maximumf %25, %26 : vector<8x128xf32>
    %c2 = arith.constant 2 : index
    %c0_15 = arith.constant 0 : index
    %28 = memref.load %arg1[%c2, %c0_15] : memref<4x2xf32, #tpu.memory_space<smem>>
    %29 = vector.broadcast %28 : f32 to vector<8x128xf32>
    %30 = arith.mulf %1, %29 : vector<8x128xf32>
    %c2_16 = arith.constant 2 : index
    %c1_17 = arith.constant 1 : index
    %31 = memref.load %arg1[%c2_16, %c1_17] : memref<4x2xf32, #tpu.memory_space<smem>>
    %32 = vector.broadcast %31 : f32 to vector<8x128xf32>
    %33 = arith.mulf %3, %32 : vector<8x128xf32>
    %34 = arith.addf %30, %33 : vector<8x128xf32>
    %c2_18 = arith.constant 2 : index
    %35 = memref.load %arg2[%c2_18] : memref<4xf32, #tpu.memory_space<smem>>
    %36 = vector.broadcast %35 : f32 to vector<8x128xf32>
    %37 = arith.addf %34, %36 : vector<8x128xf32>
    %cst_19 = arith.constant 0.000000e+00 : f32
    %38 = vector.broadcast %cst_19 : f32 to vector<8x128xf32>
    %39 = arith.maximumf %37, %38 : vector<8x128xf32>
    %c3 = arith.constant 3 : index
    %c0_20 = arith.constant 0 : index
    %40 = memref.load %arg1[%c3, %c0_20] : memref<4x2xf32, #tpu.memory_space<smem>>
    %41 = vector.broadcast %40 : f32 to vector<8x128xf32>
    %42 = arith.mulf %1, %41 : vector<8x128xf32>
    %c3_21 = arith.constant 3 : index
    %c1_22 = arith.constant 1 : index
    %43 = memref.load %arg1[%c3_21, %c1_22] : memref<4x2xf32, #tpu.memory_space<smem>>
    %44 = vector.broadcast %43 : f32 to vector<8x128xf32>
    %45 = arith.mulf %3, %44 : vector<8x128xf32>
    %46 = arith.addf %42, %45 : vector<8x128xf32>
    %c3_23 = arith.constant 3 : index
    %47 = memref.load %arg2[%c3_23] : memref<4xf32, #tpu.memory_space<smem>>
    %48 = vector.broadcast %47 : f32 to vector<8x128xf32>
    %49 = arith.addf %46, %48 : vector<8x128xf32>
    %cst_24 = arith.constant 0.000000e+00 : f32
    %50 = vector.broadcast %cst_24 : f32 to vector<8x128xf32>
    %51 = arith.maximumf %49, %50 : vector<8x128xf32>
    %c0_25 = arith.constant 0 : index
    %c0_26 = arith.constant 0 : index
    %52 = memref.load %arg3[%c0_25, %c0_26] : memref<1x4xf32, #tpu.memory_space<smem>>
    %53 = vector.broadcast %52 : f32 to vector<8x128xf32>
    %54 = arith.mulf %15, %53 : vector<8x128xf32>
    %c0_27 = arith.constant 0 : index
    %c1_28 = arith.constant 1 : index
    %55 = memref.load %arg3[%c0_27, %c1_28] : memref<1x4xf32, #tpu.memory_space<smem>>
    %56 = vector.broadcast %55 : f32 to vector<8x128xf32>
    %57 = arith.mulf %27, %56 : vector<8x128xf32>
    %58 = arith.addf %54, %57 : vector<8x128xf32>
    %c0_29 = arith.constant 0 : index
    %c2_30 = arith.constant 2 : index
    %59 = memref.load %arg3[%c0_29, %c2_30] : memref<1x4xf32, #tpu.memory_space<smem>>
    %60 = vector.broadcast %59 : f32 to vector<8x128xf32>
    %61 = arith.mulf %39, %60 : vector<8x128xf32>
    %62 = arith.addf %58, %61 : vector<8x128xf32>
    %c0_31 = arith.constant 0 : index
    %c3_32 = arith.constant 3 : index
    %63 = memref.load %arg3[%c0_31, %c3_32] : memref<1x4xf32, #tpu.memory_space<smem>>
    %64 = vector.broadcast %63 : f32 to vector<8x128xf32>
    %65 = arith.mulf %51, %64 : vector<8x128xf32>
    %66 = arith.addf %62, %65 : vector<8x128xf32>
    %c0_33 = arith.constant 0 : index
    %67 = memref.load %arg4[%c0_33] : memref<1xf32, #tpu.memory_space<smem>>
    %68 = vector.broadcast %67 : f32 to vector<8x128xf32>
    %69 = arith.addf %66, %68 : vector<8x128xf32>
    %cst_34 = arith.constant 0.000000e+00 : f32
    %70 = vector.broadcast %cst_34 : f32 to vector<8x128xf32>
    %71 = arith.subf %70, %69 : vector<8x128xf32>
    %72 = math.exp %71 : vector<8x128xf32>
    %cst_35 = arith.constant 1.000000e+00 : f32
    %73 = vector.broadcast %cst_35 : f32 to vector<8x128xf32>
    %74 = arith.addf %73, %72 : vector<8x128xf32>
    %75 = tpu.reciprocal %74 {approx = true} : vector<8x128xf32> -> vector<8x128xf32>
    %c0_36 = arith.constant 0 : index
    %c0_37 = arith.constant 0 : index
    %c0_38 = arith.constant 0 : index
    %76 = vector.load %arg6[%c0_36, %c0_37, %c0_38] : memref<1x8x128xf32, #tpu.memory_space<vmem>>, vector<1x8x128xf32>
    %77 = vector.shape_cast %76 : vector<1x8x128xf32> to vector<8x128xf32>
    %78 = vector.shape_cast %75 : vector<8x128xf32> to vector<1x8x128xf32>
    tpu.vector_store %arg6[%c0_36, %c0_37, %c0_38], %78 {strides = array<i32>} : memref<1x8x128xf32, #tpu.memory_space<vmem>>, vector<1x8x128xf32>,
    return
  }
  func.func @transform_0(%arg0: i32) -> (i32, i32) {
    %c0_i32 = arith.constant 0 : i32
    %c0_i32_0 = arith.constant 0 : i32
    %c0_i32_1 = arith.constant 0 : i32
    return %c0_i32, %c0_i32_0 : i32, i32
  }
  func.func @transform_1(%arg0: i32) -> i32 {
    %c0_i32 = arith.constant 0 : i32
    %c0_i32_0 = arith.constant 0 : i32
    return %c0_i32 : i32
  }
  func.func @transform_2(%arg0: i32) -> (i32, i32) {
    %c0_i32 = arith.constant 0 : i32
    %c0_i32_0 = arith.constant 0 : i32
    %c0_i32_1 = arith.constant 0 : i32
    return %c0_i32, %c0_i32_0 : i32, i32
  }
  func.func @transform_3(%arg0: i32) -> i32 {
    %c0_i32 = arith.constant 0 : i32
    %c0_i32_0 = arith.constant 0 : i32
    return %c0_i32 : i32
  }
  func.func @transform_4(%arg0: i32) -> (i32, i32, i32) {
    %c0_i32 = arith.constant 0 : i32
    %c0_i32_0 = arith.constant 0 : i32
    %c0_i32_1 = arith.constant 0 : i32
    return %c0_i32, %arg0, %c0_i32_0 : i32, i32, i32
  }
  func.func @transform_5(%arg0: i32) -> (i32, i32, i32) {
    %c0_i32 = arith.constant 0 : i32
    %c0_i32_0 = arith.constant 0 : i32
    %c0_i32_1 = arith.constant 0 : i32
    return %c0_i32, %arg0, %c0_i32_0 : i32, i32, i32
  }
}

</mosaic_0001>

<bundles_post_ra>
// kernel: tpu_custom_call.1
= control target key start
LH: loop header
LB: loop body
LE: loop exit
PB: predicated region body
PF: predicated region fallthrough
CT: control target
= control target key end

     0   :  { %11 = vsyncpa [#allocation6], 0  ;;  %s338_s0 = inlined_call_operand.vmem [shape: f32[4,2], index: 0, kind: input, shape index: {}]   ;;  %s339_s1 = inlined_call_operand.vmem [shape: f32[4], index: 1, kind: input, shape index: {}]   ;;  %s340_s2 = inlined_call_operand.vmem [shape: f32[1,4], index: 2, kind: input, shape index: {}]   ;;  %s341_s3 = inlined_call_operand.<no memory space> [shape: f32[1], index: 3, kind: input, shape index: {}]   ;;  %s342_s4 = inlined_call_operand.hbm [shape: f32[2,8,128], index: 4, kind: input, shape index: {}]   ;;  %s343_s5 = inlined_call_operand.hbm [shape: f32[1,8,128], index: 5, kind: output, shape index: {}]  }
   0x1   :  { %12 = vsyncpa [#allocation8], 0 }
   0x2   :  { %13 = vsyncpa [#allocation4], 0  ;;  %s29_s20 = sshll.u32 %s339_s1, 4  ;;  %s30_s20 = int_to_ptr.vmem [resolvable:$true] %s29_s20 }
   0x3   :  { %14 = vsyncpa [#allocation5], 0  ;;  %s20_s23 = sshll.u32 %s338_s0, 4  ;;  %s280_s24 = smov [#allocation7]   ;;  %s21_s23 = int_to_ptr.vmem [resolvable:$true] %s20_s23 }
   0x4   :  { %32 = dma.vmem_to_smem %s30_s20, 16, %s280_s24, [#allocation8]  }
   0x5   :  { %s281_s25 = smov [#allocation3]   ;;  %s38_s28 = sshll.u32 %s340_s2, 4  ;;  %s39_s28 = int_to_ptr.vmem [resolvable:$true] %s38_s28 }
   0x6   :  { %23 = dma.vmem_to_smem %s21_s23, 64, %s281_s25, [#allocation6]  }
   0x7   :  { %s48_s1 = sshll.u32 %s342_s4, 4  ;;  %s282_s6 = smov [#allocation9]   ;;  %s49_s1 = int_to_ptr.hbm [resolvable:$true] %s48_s1 }
   0x8   :  { %41 = dma.vmem_to_smem %s39_s28, 16, %s282_s6, [#allocation8]  }
   0x9   :  { %s283_s7 = smov [#allocation10]   ;;  %s284_s0 = smov 128  }
   0xa   :  { %s50_s8 = sshll.u32 %s283_s7, 4  ;;  %s285_s9 = smov 8   ;;  %s51_s8 = int_to_ptr.vmem [resolvable:$true] %s50_s8 }
   0xb   :  { %56 = dma.hbm_to_vmem [thread:$0]  %s49_s1, 256, %s51_s8, [#allocation4], %s284_s0, %s284_s0, %s285_s9  }
   0xc   :  { %272 = dma.done.wait [#allocation6], 64  }
   0xd   :  { %273 = vsyncadd [#allocation6], 4294967232 }
   0xe   :  { %274 = dma.done.wait [#allocation8], 32  }
   0xf   :  { %275 = vsyncadd [#allocation8], 4294967264 }
  0x10   :  { %276 = dma.done.wait [#allocation4], 256  }
  0x11   :  { %277 = vsyncadd [#allocation4], 4294967040 }
  0x12   :  { %73 = sfence }
  0x13   :  { %s77_s2 = sld [smem:[#allocation3]]  ;;  %v74_v0 = vld [vmem:[#allocation10] sm:$0xff]  ;;  %v76_v1 = vld [vmem:[#allocation10 + $0x8] sm:$0xff]  ;;  %v137_v44 = vstv %s341_s3  ;;  %s286_s26 = smov [#allocation11]  }
  0x14   :  { %s164_s10 = sld [smem:[#allocation3 + $0x1]]  ;;  %s150_s27 = sshll.u32 %s286_s26, 4  ;;  %s151_s27 = int_to_ptr.vmem [resolvable:$true] %s150_s27 }
  0x15   :  { %s84_s11 = sld [smem:[#allocation7]]  ;;  %s152_s30 = sshll.u32 %s343_s5, 4  ;;  %s153_s30 = int_to_ptr.hbm [resolvable:$true] %s152_s30 }
  0x16   :  { %s165_s4 = sld [smem:[#allocation3 + $0x80]] }
  0x17   :  { %s166_s12 = sld [smem:[#allocation3 + $0x81]] }
  0x18   :  { %s167_s13 = sld [smem:[#allocation7 + $0x1]] }
  0x19   :  { %v78_v2 = vstv %s77_s2  ;;  %s168_s14 = sld [smem:[#allocation3 + $0x100]] }
  0x1a   :  { %v79_v3 = vmul.f32 %v78_v2, %v74_v0  ;;  %v81_v4 = vstv %s164_s10  ;;  %s169_s15 = sld [smem:[#allocation3 + $0x101]] }
  0x1b   :  { %v82_v5 = vmul.f32 %v81_v4, %v76_v1  ;;  %s170_s16 = sld [smem:[#allocation7 + $0x2]]  ;;  %v85_v6 = vstv %s84_s11 }
  0x1c   :  { %v89_v7 = vstv %s165_s4  ;;  %s171_s17 = sld [smem:[#allocation3 + $0x180]] }
  0x1d   :  { %v83_v8 = vadd.f32 %v82_v5, %v79_v3  ;;  %v90_v9 = vmul.f32 %v89_v7, %v74_v0  ;;  %v92_v10 = vstv %s166_s12  ;;  %s172_s18 = sld [smem:[#allocation3 + $0x181]] }
  0x1e   :  { %v93_v11 = vmul.f32 %v92_v10, %v76_v1  ;;  %s329_s19 = sld [smem:[#allocation7 + $0x3]]  ;;  %v96_v13 = vstv %s167_s13 }
  0x1f   :  { %v86_v12 = vadd.f32 %v85_v6, %v83_v8  ;;  %v100_v14 = vstv %s168_s14  ;;  %s121_s20 = sld [smem:[#allocation9]] }
  0x20   :  { %v94_v15 = vadd.f32 %v93_v11, %v90_v9  ;;  %v101_v16 = vmul.f32 %v100_v14, %v74_v0  ;;  %v103_v17 = vstv %s169_s15  ;;  %s174_s21 = sld [smem:[#allocation9 + $0x1]] }
  0x21   :  { %v104_v18 = vmul.f32 %v103_v17, %v76_v1  ;;  %s175_s22 = sld [smem:[#allocation9 + $0x2]]  ;;  %v87_v19 = vmax.f32 %v86_v12, 0.0  ;;  %v107_v21 = vstv %s170_s16 }
  0x22   :  { %v97_v20 = vadd.f32 %v96_v13, %v94_v15  ;;  %v111_v22 = vstv %s171_s17  ;;  %s176_s23 = sld [smem:[#allocation9 + $0x3]] }
  0x23   :  { %v105_v23 = vadd.f32 %v104_v18, %v101_v16  ;;  %v112_v24 = vmul.f32 %v111_v22, %v74_v0  ;;  %v114_v25 = vstv %s172_s18 }
  0x24   :  { %v98_v26 = vmax.f32 %v97_v20, 0.0  ;;  %v115_v27 = vmul.f32 %v114_v25, %v76_v1  ;;  %v118_v29 = vstv %s329_s19 }
  0x25   :  { %v108_v28 = vadd.f32 %v107_v21, %v105_v23  ;;  %v122_v30 = vstv %s121_s20 }
  0x26   :  { %v116_v31 = vadd.f32 %v115_v27, %v112_v24  ;;  %v123_v32 = vmul.f32 %v122_v30, %v87_v19  ;;  %v125_v33 = vstv %s174_s21 }
  0x27   :  { %v109_v34 = vmax.f32 %v108_v28, 0.0  ;;  %v126_v35 = vmul.f32 %v125_v33, %v98_v26  ;;  %v129_v36 = vstv %s175_s22 }
  0x28   :  { %v119_v37 = vadd.f32 %v118_v29, %v116_v31  ;;  %v133_v40 = vstv %s176_s23 }
  0x29   :  { %v127_v38 = vadd.f32 %v126_v35, %v123_v32  ;;  %v130_v39 = vmul.f32 %v129_v36, %v109_v34 }
  0x2a   :  { %v120_v41 = vmax.f32 %v119_v37, 0.0 }
  0x2b   :  { %v131_v42 = vadd.f32 %v130_v39, %v127_v38 }
  0x2c   :  { %v134_v43 = vmul.f32 %v133_v40, %v120_v41 }
  0x2e   :  { %v135_v45 = vadd.f32 %v134_v43, %v131_v42 }
  0x30   :  { %v138_v46 = vadd.f32 %v137_v44, %v135_v45 }
  0x32   :  { %v139_v47 = vsub.f32 0.0, %v138_v46 }
  0x34   :  { %v140_v48 = vmul.f32 1.442695, %v139_v47 }
  0x36   :  { %184 = vpow2.f32 %v140_v48 }
  0x3c   :  { %v185_v49 = vpop.eup %184 }
  0x3d   :  { %v142_v50 = vadd.f32 1.0, %v185_v49 }
  0x3f   :  { %186 = vrcp.f32 %v142_v50 }
  0x45   :  { %v187_v51 = vpop.eup %186 }
  0x46   :  { %144 = vst [vmem:[#allocation11] sm:$0xff] %v187_v51 }
  0x47   :  { %155 = dma.vmem_to_hbm [thread:$0]  %s151_s27, 128, %s153_s30, [#allocation5]  }
  0x48   :  { %278 = dma.done.wait [#allocation5], 128  }
  0x49   :  { %279 = vsyncadd [#allocation5], 4294967168 }
  0x4a   :  { %160 = vsyncpa [#allocation4], 1 }
  0x4b   :  { %161 = vsyncpa [#allocation5], 1 }
  0x4c   :  { %162 = vsyncpa [#allocation6], 1 }
  0x4d   :  { %163 = vsyncpa [#allocation8], 1 }

</bundles_post_ra>
